<compile_context>
chip_gen: v7x
topology: tpu7x:2x2x1
jax: 0.10.0
libtpu: 0.0.40
codegen_flags: <defaults>
</compile_context>

<pallas_src>
import jax
import jax.numpy as jnp
from jax.experimental import pallas as pl
from jax.experimental.pallas import tpu as pltpu

_VMEM_LIMIT = 32 * 1024 * 1024   # scoped-VMEM: default on v6e/v7x, raised on v5e
_BLOCK_BUDGET = 4 * 1024 * 1024  # ~4 MiB per x block


def _nchw_kernel(x_ref, b_ref, o_ref):
    # x_ref / o_ref: (th, W) VMEM tile of one (n, c) channel slab.
    # b_ref: (C,) float32 in SMEM (whole bias array, resident across the grid).
    c = pl.program_id(1)
    o_ref[...] = (x_ref[...] + b_ref[c]).astype(o_ref.dtype)


def _rows_kernel(x_ref, b_ref, o_ref):
    # x_ref: (tm, tc) tile; b_ref: (1, tc) bias row -> VPU broadcast add.
    o_ref[...] = (x_ref[...] + b_ref[...]).astype(o_ref.dtype)


def _add_bias_nchw(x, bias_vec_f32):
    """x: (N, C, H, W).  bias_vec_f32: (C,) float32 (goes to SMEM)."""
    N, C, H, W = x.shape
    itemsize = jnp.dtype(x.dtype).itemsize

    # Row tile along H: largest multiple of 8 within the byte budget (or full H).
    row_bytes = W * itemsize
    if H * row_bytes <= _BLOCK_BUDGET or H <= 8:
        th = H
    else:
        th = min(H, max(8, (_BLOCK_BUDGET // row_bytes) // 8 * 8))

    grid = (N, C, pl.cdiv(H, th))
    total = N * C * H * W

    return pl.pallas_call(
        _nchw_kernel,
        out_shape=jax.ShapeDtypeStruct(x.shape, x.dtype),
        grid=grid,
        in_specs=[
            pl.BlockSpec((None, None, th, W), lambda n, c, h: (n, c, h, 0)),
            pl.BlockSpec(memory_space=pltpu.MemorySpace.SMEM),  # bias, whole array
        ],
        out_specs=pl.BlockSpec((None, None, th, W), lambda n, c, h: (n, c, h, 0)),
        compiler_params=pltpu.CompilerParams(
            dimension_semantics=("parallel", "parallel", "parallel"),
            vmem_limit_bytes=_VMEM_LIMIT,
        ),
        cost_estimate=pl.CostEstimate(
            flops=total,
            transcendentals=0,
            bytes_accessed=2 * total * itemsize + 4 * C,
        ),
    )(x, bias_vec_f32)


def _add_bias_2d(x, bias_row):
    """x: (M, C).  bias_row: (1, C), already cast to x.dtype."""
    M, C = x.shape
    itemsize = jnp.dtype(x.dtype).itemsize
    sub = {1: 32, 2: 16}.get(itemsize, 8)  # sublane packing per dtype

    # Lane tile: full extent unless C is very large (then a 128-multiple tile).
    tc = C if C <= 4096 else 2048

    # Row tile: byte-budgeted, sublane-aligned.
    tm = (_BLOCK_BUDGET // max(1, tc * itemsize)) // sub * sub
    tm = max(sub, min(tm, 4096))
    if tm >= M:
        if M >= 2 * sub:
            # Split into >=2 sublane-aligned row blocks so both v7x TCs get work.
            half = (M + 1) // 2
            tm = ((half + sub - 1) // sub) * sub
        else:
            tm = M  # tiny input: one full block ("equal full dim" is always legal)

    grid = (pl.cdiv(M, tm), pl.cdiv(C, tc))
    total = M * C

    return pl.pallas_call(
        _rows_kernel,
        out_shape=jax.ShapeDtypeStruct((M, C), x.dtype),
        grid=grid,
        in_specs=[
            pl.BlockSpec((tm, tc), lambda i, j: (i, j)),
            pl.BlockSpec((1, tc), lambda i, j: (0, j)),  # constant index when tc==C
        ],
        out_specs=pl.BlockSpec((tm, tc), lambda i, j: (i, j)),
        compiler_params=pltpu.CompilerParams(
            dimension_semantics=("parallel", "parallel"),
            vmem_limit_bytes=_VMEM_LIMIT,
        ),
        cost_estimate=pl.CostEstimate(
            flops=total,
            transcendentals=0,
            bytes_accessed=2 * total * itemsize + C * itemsize,
        ),
    )(x, bias_row)


def add_bias(x, bias_param):
    """Forward pass of AddBias.  bias_param has shape (C, 1) like the torch parameter."""
    bias_vec = bias_param.reshape(-1)  # (C,) — same values as ._bias.t().reshape(1,-1)
    if x.ndim == 2:
        return _add_bias_2d(x, bias_vec.reshape(1, -1).astype(x.dtype))
    elif x.ndim == 4:
        # Bias kept as float32 scalars in SMEM; result cast back to x.dtype.
        return _add_bias_nchw(x, bias_vec.astype(jnp.float32))
    else:
        raise ValueError(f"AddBias expects 2-D or 4-D input, got ndim={x.ndim}")


if __name__ == "__main__":
    key = jax.random.PRNGKey(0)
    k_b, k_x4, k_x2 = jax.random.split(key, 3)

    # ---- 4-D (NCHW) case: batch=2, channels=4, spatial=16x16 ----
    C = 4
    bias = jax.random.normal(k_b, (C,), dtype=jnp.float32)
    bias_param = bias[:, None]  # (C, 1), like nn.Parameter(bias.unsqueeze(1))

    x4 = jax.random.normal(k_x4, (2, C, 16, 16), dtype=jnp.float32)
    y4 = jax.block_until_ready(add_bias(x4, bias_param))
    ref4 = x4 + bias.reshape(1, C, 1, 1)
    assert y4.shape == x4.shape and y4.dtype == x4.dtype
    assert jnp.allclose(y4, ref4, atol=1e-6), "4-D mismatch"

    # ---- 2-D case: batch=8, features=C ----
    x2 = jax.random.normal(k_x2, (8, C), dtype=jnp.float32)
    y2 = jax.block_until_ready(add_bias(x2, bias_param))
    ref2 = x2 + bias.reshape(1, C)
    assert y2.shape == x2.shape and y2.dtype == x2.dtype
    assert jnp.allclose(y2, ref2, atol=1e-6), "2-D mismatch"

    print("KERNEL_OK")
</pallas_src>

<mosaic_0001>
module attributes {stable_mosaic.version = 11 : i64} {
  func.func @_nchw_kernel(%arg0: i32, %arg1: i32, %arg2: i32, %arg3: memref<1x1x16x16xf32, #tpu.memory_space<vmem>>, %arg4: memref<4xf32, #tpu.memory_space<smem>>, %arg5: memref<1x1x16x16xf32, #tpu.memory_space<vmem>>) attributes {dimension_semantics = [#tpu.dimension_semantics<parallel>, #tpu.dimension_semantics<parallel>, #tpu.dimension_semantics<parallel>], iteration_bounds = array<i64: 2, 4, 1>, scalar_prefetch = 0 : i64, scratch_operands = 0 : i64, tpu.core_type = #tpu.core_type<tc>, window_params = [{transform_indices = @transform_0, window_bounds = array<i64: 1, 1, 16, 16>}, {transform_indices = @transform_1, window_bounds = array<i64: 4>}, {transform_indices = @transform_2, window_bounds = array<i64: 1, 1, 16, 16>}]} {
    %c0 = arith.constant 0 : index
    %c0_0 = arith.constant 0 : index
    %c0_1 = arith.constant 0 : index
    %c0_2 = arith.constant 0 : index
    %0 = vector.load %arg3[%c0, %c0_0, %c0_1, %c0_2] : memref<1x1x16x16xf32, #tpu.memory_space<vmem>>, vector<1x1x16x16xf32>
    %1 = vector.shape_cast %0 : vector<1x1x16x16xf32> to vector<16x16xf32>
    %2 = arith.index_cast %arg1 : i32 to index
    %3 = memref.load %arg4[%2] : memref<4xf32, #tpu.memory_space<smem>>
    %4 = vector.broadcast %3 : f32 to vector<16x16xf32>
    %5 = arith.addf %1, %4 : vector<16x16xf32>
    %c0_3 = arith.constant 0 : index
    %c0_4 = arith.constant 0 : index
    %c0_5 = arith.constant 0 : index
    %c0_6 = arith.constant 0 : index
    %6 = vector.load %arg5[%c0_3, %c0_4, %c0_5, %c0_6] : memref<1x1x16x16xf32, #tpu.memory_space<vmem>>, vector<1x1x16x16xf32>
    %7 = vector.shape_cast %6 : vector<1x1x16x16xf32> to vector<16x16xf32>
    %8 = vector.shape_cast %5 : vector<16x16xf32> to vector<1x1x16x16xf32>
    tpu.vector_store %arg5[%c0_3, %c0_4, %c0_5, %c0_6], %8 {strides = array<i32>} : memref<1x1x16x16xf32, #tpu.memory_space<vmem>>, vector<1x1x16x16xf32>,
    return
  }
  func.func @transform_0(%arg0: i32, %arg1: i32, %arg2: i32) -> (i32, i32, i32, i32) {
    %c0_i32 = arith.constant 0 : i32
    %c0_i32_0 = arith.constant 0 : i32
    return %arg0, %arg1, %arg2, %c0_i32 : i32, i32, i32, i32
  }
  func.func @transform_1(%arg0: i32, %arg1: i32, %arg2: i32) -> i32 {
    %c0_i32 = arith.constant 0 : i32
    %c0_i32_0 = arith.constant 0 : i32
    return %c0_i32 : i32
  }
  func.func @transform_2(%arg0: i32, %arg1: i32, %arg2: i32) -> (i32, i32, i32, i32) {
    %c0_i32 = arith.constant 0 : i32
    %c0_i32_0 = arith.constant 0 : i32
    return %arg0, %arg1, %arg2, %c0_i32 : i32, i32, i32, i32
  }
}

</mosaic_0001>

<bundles_post_ra>
// kernel: tpu_custom_call.1
= control target key start
LH: loop header
LB: loop body
LE: loop exit
PB: predicated region body
PF: predicated region fallthrough
CT: control target
= control target key end

     0   :  { %s843_s0 = inlined_call_operand.hbm [shape: f32[2,4,16,16], index: 0, kind: input, shape index: {}]   ;;  %s844_s1 = inlined_call_operand.vmem [shape: f32[4], index: 1, kind: input, shape index: {}]   ;;  %s845_s2 = inlined_call_operand.hbm [shape: f32[2,4,16,16], index: 2, kind: output, shape index: {}]  }
   0x1   :  { %852 = sst [smem:[#allocation14_spill]] %s844_s1 }
   0x2   :  { %7 = vsyncpa [#allocation3], 0 }
   0x3   :  { %9 = vsyncpa [#allocation3 + $0x1], 0 }
   0x4   :  { %10 = vsyncpa [#allocation5], 0 }
   0x5   :  { %11 = vsyncpa [#allocation4], 0 }
   0x6   :  { %13 = vsyncpa [#allocation4 + $0x1], 0  ;;  %s628_s9 = smov 0   ;;  %s630_s10 = smov 0  }
   0x7   :  { %s632_s11 = smov 0   ;;  %s634_s12 = smov 0  }
   0x8   :  { %s636_s13 = smov 0   ;;  %s638_s14 = smov 0  }
   0x9   :  { %s640_s15 = smov 0   ;;  %s642_s16 = smov 0  }
   0xa LB: > { %853 = sst [smem:[#allocation11_spill]] %s596_s14  ;;  %s345_s17 = sadd.s32 4294967295, %s604_s16   ;;  %s604_s16 = sphi %s642_s16, %s19_s16   ;;  %s600_s15 = sphi %s640_s15, %s876_s15   ;;  %s596_s14 = sphi %s638_s14, %s875_s14   ;;  %s592_s13 = sphi %s636_s13, %s874_s13   ;;  %s588_s12 = sphi %s634_s12, %s869_s12   ;;  %s584_s11 = sphi %s632_s11, %s873_s11   ;;  %s580_s10 = sphi %s630_s10, %s872_s10   ;;  %s576_s9 = sphi %s628_s9, %s871_s9  }
   0xb   : > { %s346_s18 = sadd.s32 4294967294, %s604_s16   ;;  %p56_p0 = scmp.ne.s32.totalorder %s584_s11, %s580_s10 }
   0xc   : > { %p57_p1 = scmp.eq.s32.totalorder %s604_s16, 0  ;;  %p62_p2 = scmp.ne.s32.totalorder %s580_s10, %s576_s9 }
   0xd   : > { %p676_p3 = scmp.eq.s32.totalorder %s345_s17, 0  ;;  %p111_p4 = scmp.eq.s32.totalorder %s345_s17, 7 }
   0xe   : > { %p58_p5 = por %p57_p1, %p56_p0  ;;  %p117_p6 = scmp.eq.s32.totalorder %s346_s18, 7 }
   0xf   : > { %p682_p7 = por %p676_p3, %p62_p2  ;;  %p686_p8 = por %p111_p4, %p56_p0 }
  0x10   : > { %p690_p9 = por %p117_p6, %p62_p2  ;;  %p347_p10 = scmp.ge.s32.totalorder %s604_s16, 1 }
  0x11   : > { %s855_s21 = scalar_select %p682_p7, 1, 0 }
  0x12   : > { %s856_s22 = scalar_select %p686_p8, 1, 0 }
  0x13   : > { %s857_s23 = scalar_select %p690_p9, 1, 0 }
  0x14   : > { %p124_p11 = scmp.lt.s32.totalorder %s604_s16, 9  ;;  %s859_s1 = sld [smem:[#allocation14_spill]] }
  0x15   : > { %858 = sst [smem:[#allocation12_spill]] %s857_s23  ;;  %p385_p13 = scmp.lt.s32.totalorder %s604_s16, 8 }
  0x16   : > { %p699_p12 = pnand %p347_p10, %p124_p11  ;;  %s34_s29 = sadd.s32 1, %s596_s14 }
  0x17   : > { %p706_p1 = pnand %p385_p13, %p58_p5 }
  0x18   : > { %s860_s27 = scalar_select %p699_p12, 1, 0 }
  0x19   : > { %p372_p0 = pneg %p699_p12 }
  0x1a   : > { %s137_s26 = sshll.u32 %s859_s1, 4  ;;  %s138_s26 = int_to_ptr.vmem [resolvable:$true] %s137_s26 }
  0x1b   : > { %p373_p2 = pnand %p372_p0, %p676_p3  ;;  %s457_s30 = scalar_lea.vmem %s138_s26, 16 }
  0x1c   : > { %p458_p4 = scmp.ne.s32.totalorder %s138_s26, %s457_s30  ;;  %p465_p11 = scmp.lt.s32.totalorder %s138_s26, %s138_s26 }
  0x1d   : > { %p459_p6 = pneg %p373_p2  ;;  %p466_p8 = scmp.lt.s32.totalorder %s457_s30, %s457_s30 }
  0x1f   : > { %p460_p9 = pnand %p459_p6, %p458_p4  ;;  %p467_p7 = por %p466_p8, %p465_p11 }
  0x21   : > { %p461_p10 = pneg %p460_p9 }
  0x23   : > { %p468_p12 = pnand %p467_p7, %p461_p10 }
  0x25   : > { %471 = shalt.err (!%p468_p12)
}
  0x26   : > { %s606_s3 = smov [#allocation6]   ;;  %p36_p5 = scmp.ge.s32.totalorder %s34_s29, 4 }
  0x27   : > { %375 = dma.vmem_to_smem (!%p373_p2), %s138_s26, 16, %s606_s3, [#allocation5]  }
  0x28   : > { %s38_s4 = sadd.s32 1, %s600_s15  ;;  %s148_s5 = sand.u32 1, %s584_s11  }
  0x29   : > { %s351_s6 = sshll.u32 %s596_s14, 1  ;;  %s878_s29 = smov (%p36_p5, %s34_s29), 0 }
  0x2a   : > { %862 = sst [smem:[#allocation13_spill]] %s878_s29  ;;  %s880_s4 = smov (!%p36_p5, %s38_s4), %s600_s15 }
  0x2b   : > { %s43_s7 = ssub.s32 %s596_s14, %s878_s29  ;;  %p40_p7 = scmp.ge.s32.totalorder %s880_s4, 2 }
  0x2c   : > { %s350_s8 = sshll.u32 %s148_s5, 4  ;;  %s352_s17 = sshll.u32 %s600_s15, 3 }
  0x2d   : > { %s882_s4 = smov (%p40_p7, %s880_s4), 0  ;;  %s160_s18 = sadd.s32 %s352_s17, %s351_s6 }
  0x2e   : > { %s152_s24 = scalar_lea.vmem [#allocation2], %s350_s8  ;;  %s42_s26 = ssub.s32 %s600_s15, %s882_s4 }
  0x2f   : > { %s163_s25 = sshll.u32 %s152_s24, 4  ;;  %s353_s30 = sshll.u32 %s160_s18, 7  ;;  %s731_s25 = int_to_ptr.vmem [resolvable:$true] %s163_s25 }
  0x30   : > { %s44_s3 = sor.u32 %s43_s7, %s42_s26  ;;  %s729_s23 = scalar_lea.hbm %s843_s0, %s353_s30 }
  0x31   : > { %p47_p8 = scmp.eq.s32.totalorder %s44_s3, 0  ;;  %s863_s29 = sadd.s32 1, %s584_s11 }
  0x32   : > { %s738_s6 = scalar_lea.sflag [#allocation3], %s148_s5  ;;  %s472_s8 = scalar_lea.hbm %s729_s23, 256 }
  0x33   : > { %s736_s14 = scalar_select %p47_p8, %s584_s11, %s863_s29  }
  0x34   : > { %p473_p9 = scmp.ne.s32.totalorder %s729_s23, %s472_s8  ;;  %p474_p12 = pneg %p706_p1 }
  0x35   : > { %s477_s7 = scalar_lea.hbm %s843_s0, 2048  ;;  %p478_p2 = scmp.lt.u32.totalorder %s729_s23, %s843_s0 }
  0x36   : > { %p475_p13 = pnand %p474_p12, %p473_p9  ;;  %p479_p4 = scmp.lt.u32.totalorder %s477_s7, %s472_s8 }
  0x37   : > { %p481_p10 = scmp.lt.u32.totalorder %s472_s8, %s729_s23 }
  0x38   : > { %p476_p0 = pneg %p475_p13  ;;  %p480_p6 = por %p479_p4, %p478_p2 }
  0x3a   : > { %p482_p11 = por %p481_p10, %p480_p6 }
  0x3c   : > { %p483_p5 = pnand %p482_p11, %p476_p0 }
  0x3e   : > { %486 = shalt.err (!%p483_p5)
}
  0x3f   : > { %s487_s29 = scalar_lea.vmem %s731_s25, 256  ;;  %s607_s5 = smov [#allocation2]  }
  0x40   : > { %p488_p7 = scmp.ne.s32.totalorder %s731_s25, %s487_s29  ;;  %s492_s24 = sshll.u32 %s607_s5, 4  ;;  %s493_s24 = int_to_ptr.vmem [resolvable:$false] %s492_s24 }
  0x41   : > { %s494_s26 = scalar_lea.vmem %s493_s24, 512  ;;  %p495_p13 = scmp.lt.s32.totalorder %s731_s25, %s493_s24 }
  0x42   : > { %p490_p8 = pnand %p488_p7, %p474_p12  ;;  %p496_p2 = scmp.lt.s32.totalorder %s494_s26, %s487_s29 }
  0x44   : > { %p491_p9 = pneg %p490_p8  ;;  %p497_p4 = por %p496_p2, %p495_p13 }
  0x46   : > { %p498_p6 = pnand %p497_p4, %p491_p9 }
  0x48   : > { %501 = shalt.err (!%p498_p6)
}
  0x49   : > { %s608_s30 = smov 128   ;;  %s609_s3 = smov 8  }
  0x4a   : > { %379 = dma.hbm_to_vmem [thread:$0]  (!%p706_p1), %s729_s23, 256, %s731_s25, %s738_s6, %s608_s30, %s608_s30, %s609_s3  }
  0x4b   : > { %p864_p12 = scmp.ne.s32.totalorder %s860_s27, 0 }
  0x4c   : > { %s769_s8 = sand.u32 (!%p864_p12), 1, %s580_s10   ;;  %p865_p0 = scmp.ne.s32.totalorder (!%p864_p12), %s855_s21, 0 }
  0x4d   : > { %175 = sbr.rel (%p864_p12) target bundleno = 118 (0x76), region = 28  ;;  %s355_s1 = sshll.u32 (!%p864_p12), %s769_s8, 4 }
  0x4e   : > { %s178_s19 = scalar_lea.sflag (!%p864_p12), [#allocation3], %s769_s8  ;;  %s181_s7 = scalar_lea.vmem (!%p864_p12), [#allocation2], %s355_s1 }
  0x54   : > { %563 = dma.done.wait (%p865_p0), %s178_s19, 256  }
  0x55   : > { %565 = vsyncadd (%p865_p0), %s178_s19, 4294967040 }
  0x56   : > { %567 = dma.done.wait (%p676_p3), [#allocation5], 16  }
  0x57   : > { %569 = vsyncadd (%p676_p3), [#allocation5], 4294967280 }
  0x58   : > { %190 = sfence }
  0x59   : > { %s211_s23 = sld [smem:[#allocation6 + %s588_s12]]  ;;  %s359_s27 = sshll.u32 %s588_s12, 1  ;;  %v209_v0 = vld [vmem:[%s181_s7] sm:$0xff]  ;;  %v210_v1 = vld [vmem:[%s181_s7 + $0x8] sm:$0xff]  ;;  %vm215_vm0 = vcmask 130048  }
  0x5a   : > { %s206_s28 = scalar_lea.vmem [#allocation7], %s355_s1  ;;  %s360_s6 = sshll.u32 %s592_s13, 3 }
  0x5b   : > { %s236_s25 = sshll.u32 %s206_s28, 4  ;;  %s233_s21 = sadd.s32 %s360_s6, %s359_s27  ;;  %s784_s25 = int_to_ptr.vmem [resolvable:$true] %s236_s25 }
  0x5c   : > { %s361_s17 = sshll.u32 %s233_s21, 7  ;;  %s219_s13 = scalar_lea.sflag [#allocation4], %s769_s8 }
  0x5d   : > { %s789_s18 = scalar_lea.hbm %s845_s2, %s361_s17  ;;  %s502_s29 = scalar_lea.vmem %s784_s25, 256 }
  0x5e   : > { %p503_p3 = scmp.ne.s32.totalorder %s784_s25, %s502_s29  ;;  %p866_p1 = scmp.ne.s32.totalorder %s856_s22, 0 }
  0x5f   : > { %v212_v2 = vstv %s211_s23  ;;  %s610_s5 = smov [#allocation7]  }
  0x60   : > { %v213_v3 = vadd.f32 %v212_v2, %v209_v0  ;;  %v214_v4 = vadd.f32 %v212_v2, %v210_v1  ;;  %p504_p10 = pnand %p503_p3, %p866_p1  ;;  %s506_s24 = sshll.u32 %s610_s5, 4  ;;  %s507_s24 = int_to_ptr.vmem [resolvable:$false] %s506_s24 }
  0x61   : > { %s508_s26 = scalar_lea.vmem %s507_s24, 512  ;;  %p509_p5 = scmp.lt.s32.totalorder %s784_s25, %s507_s24 }
  0x62   : > { %216 = vst.msk [vmem:[%s206_s28] sm:$0xff] %vm215_vm0, %v213_v3  ;;  %217 = vst.msk [vmem:[%s206_s28 + $0x8] sm:$0xff] %vm215_vm0, %v214_v4  ;;  %p505_p11 = pneg %p504_p10  ;;  %p510_p7 = scmp.lt.s32.totalorder %s508_s26, %s502_s29 }
  0x64   : > { %p511_p8 = por %p510_p7, %p509_p5 }
  0x66   : > { %p512_p9 = pnand %p511_p8, %p505_p11 }
  0x68   : > { %515 = shalt.err (!%p512_p9)
}
  0x69   : > { %s516_s30 = scalar_lea.hbm %s789_s18, 256  ;;  %s520_s19 = scalar_lea.hbm %s845_s2, 2048 }
  0x6a   : > { %p517_p13 = scmp.ne.s32.totalorder %s789_s18, %s516_s30  ;;  %p521_p6 = scmp.lt.u32.totalorder %s789_s18, %s845_s2 }
  0x6b   : > { %p522_p12 = scmp.lt.u32.totalorder %s520_s19, %s516_s30  ;;  %p524_p3 = scmp.lt.u32.totalorder %s516_s30, %s789_s18 }
  0x6c   : > { %p518_p2 = pnand %p517_p13, %p866_p1 }
  0x6d   : > { %p523_p0 = por %p522_p12, %p521_p6 }
  0x6e   : > { %p519_p4 = pneg %p518_p2 }
  0x6f   : > { %p525_p10 = por %p524_p3, %p523_p0 }
  0x71   : > { %p526_p11 = pnand %p525_p10, %p519_p4 }
  0x73   : > { %529 = shalt.err (!%p526_p11)
}
  0x74   : > { %s611_s27 = smov 128   ;;  %s612_s28 = smov 8  }
  0x75   : > { %370 = dma.vmem_to_hbm [thread:$0]  (%p866_p1), %s784_s25, 256, %s789_s18, %s219_s13, %s611_s27, %s611_s27, %s612_s28  }
  0x76 PF: > { %s867_s6 = sld [smem:[#allocation12_spill]]  ;;  %p387_p5 = scmp.ge.s32.totalorder %s604_s16, 2 }
  0x77   : > { %s251_s21 = sand.u32 1, %s576_s9  }
  0x78   : > { %s252_s17 = scalar_lea.sflag [#allocation4], %s251_s21 }
  0x7c   : > { %p868_p7 = scmp.ne.s32.totalorder %s867_s6, 0 }
  0x7e   : > { %p381_p8 = pnand %p387_p5, %p868_p7 }
  0x80   : > { %571 = dma.done.wait (!%p381_p8), %s252_s17, 256  }
  0x81   : > { %573 = vsyncadd (!%p381_p8), %s252_s17, 4294967040  ;;  %s19_s16 = sadd.s32 1, %s604_s16   ;;  %s869_s12 = sld [smem:[#allocation11_spill]] }
  0x82   : > { %p16_p9 = scmp.ge.s32.totalorder %s19_s16, 10   ;;  %s870_s22 = sld [smem:[#allocation13_spill]] }
  0x83   : > { %s871_s9 = smov %s580_s10  ;;  %s872_s10 = smov %s584_s11 }
  0x84   : > { %s873_s11 = smov %s736_s14  ;;  %s874_s13 = smov %s600_s15 }
  0x85   : > { %s876_s15 = smov %s882_s4  ;;  %18 = sbr.rel (!%p16_p9) target bundleno = 10 (0xa), region = 78 }
  0x88   : > { %s875_s14 = smov %s870_s22 }
  0x8c   :  { %257 = vsyncpa [#allocation3], 1 }
  0x8d   :  { %259 = vsyncpa [#allocation3 + $0x1], 1 }
  0x8e   :  { %260 = vsyncpa [#allocation4], 1 }
  0x8f   :  { %262 = vsyncpa [#allocation4 + $0x1], 1 }
  0x90   :  { %263 = vsyncpa [#allocation5], 1 }
  0x91   :  { %265 = vsyncpa [#allocation5 + $0x1], 1 }

</bundles_post_ra>
